<compile_context>
chip_gen: v6e
topology: v6e:2x2x1
jax: 0.10.0
libtpu: 0.0.40
codegen_flags: <defaults>
</compile_context>

<pallas_src>
import functools

import numpy as np
import jax
import jax.numpy as jnp
from jax.experimental import pallas as pl
from jax.experimental.pallas import tpu as pltpu


def _upsample_rows_kernel(x_ref, sel_ref, o_ref, *, scale: int, w_tile: int,
                          fold_rows: bool):
    """x_ref: (T, W) input rows.  sel_ref: resident 0/1 duplication matrix,
    (Wt, s*Wt) or (W, s*s*W) when fold_rows.  o_ref: (T, s*s*W) super-rows."""
    s = scale
    w = x_ref.shape[-1]
    sw = s * w

    if fold_rows:
        # Small / lane-unaligned widths: row duplication is folded into `sel`,
        # so this is ONE matmul and ONE full-block store (no masked stores).
        out = jnp.dot(x_ref[...], sel_ref[...],
                      preferred_element_type=jnp.float32)
        o_ref[...] = out.astype(o_ref.dtype)
        return

    # Lane-aligned path: tile the contraction to Wt (identical block-diagonal
    # `sel` block for every W tile), then duplicate rows with `s` replicated,
    # 128-aligned, full-lane stores.
    swt = s * w_tile
    for j in range(w // w_tile):                 # static, few iterations
        xw = jnp.dot(x_ref[:, j * w_tile:(j + 1) * w_tile], sel_ref[...],
                     preferred_element_type=jnp.float32)
        xw = xw.astype(o_ref.dtype)
        for r in range(s):
            off = r * sw + j * swt               # multiple of 128 on this path
            o_ref[:, off:off + swt] = xw


def _pick_w_tile(w: int, s: int) -> tuple[int, bool]:
    """Contraction tile Wt and whether to fold row-duplication into `sel`."""
    if (s * w) % 128 != 0:
        # Small / unaligned widths: fold rows into sel (single full store).
        # TODO(synk): very wide non-128-aligned W keeps a full-W contraction
        #             here; fine for typical generator widths (powers of two).
        return w, True
    for wt in (256, 128):
        if w > wt and w % wt == 0:
            return wt, False
    return w, False


def _build_sel(w: int, s: int, w_tile: int, fold_rows: bool, dtype):
    """0/1 duplication matrix, built once on the host (DMA'd once, resident)."""
    if fold_rows:
        # sel[w_, o] = 1  iff  w_ == (o mod s*W) // s   (row dup folded in)
        src = (np.arange(s * s * w) % (s * w)) // s
        rows_idx = np.arange(w)
    else:
        # sel[w_, ow] = 1  iff  w_ == ow // s
        src = np.arange(s * w_tile) // s
        rows_idx = np.arange(w_tile)
    sel = (rows_idx[:, None] == src[None, :]).astype(np.float32)
    return jnp.asarray(sel, dtype=dtype)


def _pick_rows_per_block(n_rows: int, out_row_bytes: int, align: int) -> int:
    """Rows per grid step: ~6 MiB of output per step (85%+ of HBM roofline per
    measured tiled-copy data), while keeping >= 2 grid steps when possible so
    the single "parallel" axis can be split across v7x's two TensorCores."""
    if n_rows <= align:
        return n_rows
    target_bytes = 6 << 20
    cap = max(align, (target_bytes // max(out_row_bytes, 1)) // align * align)
    if cap >= n_rows:
        # Whole tensor fits in one step -> still split in two for megacore.
        half = -(-((n_rows + 1) // 2) // align) * align
        return min(half, n_rows)
    # Mild preference for a divisor of n_rows (no ragged tail block), but never
    # shrink the block below half the target.
    t = cap
    while t >= max(align, cap // 2):
        if n_rows % t == 0:
            return t
        t -= align
    return cap


def upsample_nearest(x, scale_factor: int = 2, rows_per_block: int | None = None):
    """nnf.interpolate(x, scale_factor=scale_factor, mode='nearest') for NCHW x."""
    if isinstance(scale_factor, float) and scale_factor.is_integer():
        scale_factor = int(scale_factor)
    if not isinstance(scale_factor, int) or scale_factor < 1:
        # TODO(synk): fractional scale_factor / explicit `size=` not implemented.
        raise NotImplementedError("only integer scale_factor >= 1 is supported")
    if x.dtype not in (jnp.float32, jnp.bfloat16):
        # TODO(synk): f64/f16/int dtypes would need a non-MXU gather formulation.
        raise NotImplementedError("float32 / bfloat16 only")

    n, c, h, w = x.shape
    s = scale_factor
    if s == 1:
        return x

    rows = n * c * h
    out_cols = s * s * w
    x2 = x.reshape(rows, w)                       # free reshape of NCHW

    w_tile, fold_rows = _pick_w_tile(w, s)
    sel = _build_sel(w, s, w_tile, fold_rows, x.dtype)

    # Sublane packing: bf16 packs 2 rows/sublane -> 16-row granularity.
    align = 16 if x.dtype == jnp.bfloat16 else 8
    if rows_per_block is not None:
        tile_r = min(int(rows_per_block), rows)
        if tile_r < rows:
            tile_r = max(align, (tile_r // align) * align)
    else:
        tile_r = _pick_rows_per_block(rows, out_cols * x.dtype.itemsize, align)

    grid = (pl.cdiv(rows, tile_r),)

    kernel = functools.partial(_upsample_rows_kernel, scale=s, w_tile=w_tile,
                               fold_rows=fold_rows)
    out2 = pl.pallas_call(
        kernel,
        out_shape=jax.ShapeDtypeStruct((rows, out_cols), x.dtype),
        grid=grid,
        in_specs=[
            pl.BlockSpec((tile_r, w), lambda i: (i, 0)),
            # Constant block index -> `sel` is DMA'd once and stays resident.
            pl.BlockSpec(sel.shape, lambda i: (0, 0)),
        ],
        out_specs=pl.BlockSpec((tile_r, out_cols), lambda i: (i, 0)),
        # TODO(synk): consider pipeline_mode=pl.Buffered(3) on the output spec
        #             if the (s^2-larger) write-back DMA is still exposed.
        compiler_params=pltpu.CompilerParams(
            dimension_semantics=("parallel",),
            vmem_limit_bytes=40 * 1024 * 1024,   # covers big blocks on v5e, safe on v7x
        ),
    )(x2, sel)

    # (rows, s*s*W) -> (N, C, s*H, s*W) is again a free reshape of the same memory.
    return out2.reshape(n, c, h * s, w * s)


if __name__ == "__main__":
    key = jax.random.PRNGKey(0)

    def ref_upsample(a, s):
        return jnp.repeat(jnp.repeat(a, s, axis=2), s, axis=3)

    # 1) Primary check: module's typical use, NCHW float32, 2x upsample.
    x = jax.random.normal(key, (2, 4, 16, 16), dtype=jnp.float32)
    y = jax.block_until_ready(upsample_nearest(x, scale_factor=2))
    assert y.shape == (2, 4, 32, 32), y.shape
    np.testing.assert_allclose(np.asarray(y), np.asarray(ref_upsample(x, 2)),
                               rtol=0, atol=0)

    # 2) Ragged multi-block grid path (rows=128, block=48 -> 48/48/32 rows).
    y2 = jax.block_until_ready(upsample_nearest(x, scale_factor=2, rows_per_block=48))
    np.testing.assert_allclose(np.asarray(y2), np.asarray(ref_upsample(x, 2)),
                               rtol=0, atol=0)

    # 3) bf16 end-to-end (exact 0/1 weights), lane-aligned store path (s*W=128).
    xb = jax.random.normal(jax.random.PRNGKey(0), (2, 4, 32, 64), dtype=jnp.bfloat16)
    yb = jax.block_until_ready(upsample_nearest(xb, scale_factor=2))
    np.testing.assert_allclose(np.asarray(yb.astype(jnp.float32)),
                               np.asarray(ref_upsample(xb, 2).astype(jnp.float32)),
                               rtol=0, atol=0)

    # 4) Realistic width, f32, exercises the in-kernel W-tiled (Wt=128) path and
    #    guards f32 bit-exactness (full-mantissa random values, atol=0).
    xw = jax.random.normal(jax.random.PRNGKey(0), (1, 2, 8, 256), dtype=jnp.float32)
    yw = jax.block_until_ready(upsample_nearest(xw, scale_factor=2))
    np.testing.assert_allclose(np.asarray(yw), np.asarray(ref_upsample(xw, 2)),
                               rtol=0, atol=0)

    # 5) Generality: scale_factor=3 (folded-sel path + ragged last row block).
    x3 = jax.random.normal(jax.random.PRNGKey(0), (1, 3, 8, 8), dtype=jnp.float32)
    y3 = jax.block_until_ready(upsample_nearest(x3, scale_factor=3))
    np.testing.assert_allclose(np.asarray(y3), np.asarray(ref_upsample(x3, 3)),
                               rtol=0, atol=0)

    print("KERNEL_OK")
</pallas_src>

<mosaic_0001>
module attributes {stable_mosaic.version = 11 : i64} {
  func.func @_upsample_rows_kernel(%arg0: i32, %arg1: memref<64x16xf32, #tpu.memory_space<vmem>>, %arg2: memref<16x64xf32, #tpu.memory_space<vmem>>, %arg3: memref<64x64xf32, #tpu.memory_space<vmem>>) attributes {dimension_semantics = [#tpu.dimension_semantics<parallel>], iteration_bounds = array<i64: 2>, scalar_prefetch = 0 : i64, scratch_operands = 0 : i64, tpu.core_type = #tpu.core_type<tc>, window_params = [{transform_indices = @transform_0, window_bounds = array<i64: 64, 16>}, {pipeline_mode = #tpu.pipeline_mode<synchronous>, transform_indices = @transform_1, window_bounds = array<i64: 16, 64>}, {transform_indices = @transform_2, window_bounds = array<i64: 64, 64>}]} {
    %c0 = arith.constant 0 : index
    %c0_0 = arith.constant 0 : index
    %0 = vector.load %arg1[%c0, %c0_0] : memref<64x16xf32, #tpu.memory_space<vmem>>, vector<64x16xf32>
    %c0_1 = arith.constant 0 : index
    %c0_2 = arith.constant 0 : index
    %1 = vector.load %arg2[%c0_1, %c0_2] : memref<16x64xf32, #tpu.memory_space<vmem>>, vector<16x64xf32>
    %cst = arith.constant dense<0.000000e+00> : vector<64x64xf32>
    %2 = tpu.matmul %0, %1, %cst {dimension_numbers = #tpu.dot_dimension_numbers<[1], [0], [0], [1], [0, 0, 1, 1], [], []>} : vector<64x16xf32>, vector<16x64xf32>, vector<64x64xf32> -> vector<64x64xf32>
    %c0_3 = arith.constant 0 : index
    %c0_4 = arith.constant 0 : index
    %3 = vector.load %arg3[%c0_3, %c0_4] : memref<64x64xf32, #tpu.memory_space<vmem>>, vector<64x64xf32>
    tpu.vector_store %arg3[%c0_3, %c0_4], %2 {strides = array<i32>} : memref<64x64xf32, #tpu.memory_space<vmem>>, vector<64x64xf32>,
    return
  }
  func.func @transform_0(%arg0: i32) -> (i32, i32) {
    %c0_i32 = arith.constant 0 : i32
    %c0_i32_0 = arith.constant 0 : i32
    return %arg0, %c0_i32 : i32, i32
  }
  func.func @transform_1(%arg0: i32) -> (i32, i32) {
    %c0_i32 = arith.constant 0 : i32
    %c0_i32_0 = arith.constant 0 : i32
    %c0_i32_1 = arith.constant 0 : i32
    return %c0_i32, %c0_i32_0 : i32, i32
  }
  func.func @transform_2(%arg0: i32) -> (i32, i32) {
    %c0_i32 = arith.constant 0 : i32
    %c0_i32_0 = arith.constant 0 : i32
    return %arg0, %c0_i32 : i32, i32
  }
}

</mosaic_0001>

<bundles_post_ra>
// kernel: tpu_custom_call.1
= control target key start
LH: loop header
LB: loop body
LE: loop exit
PB: predicated region body
PF: predicated region fallthrough
CT: control target
= control target key end

     0   :  { %s432_s9 = smov 0   ;;  %s471_s0 = inlined_call_operand.vmem [shape: f32[128,16], index: 0, kind: input, shape index: {}]   ;;  %s472_s1 = inlined_call_operand.vmem [shape: f32[16,64], index: 1, kind: input, shape index: {}]   ;;  %s473_s2 = inlined_call_operand.vmem [shape: f32[128,64], index: 2, kind: output, shape index: {}]  }
   0x1 LB: > { %s352_s10 = sadd.s32 4294967295, %s415_s9   ;;  %p356_p0 = scmp.ge.s32.totalorder %s415_s9, 1  ;;  %s415_s9 = sphi %s432_s9, %s12_s9  }
   0x2   : > { %p113_p1 = scmp.lt.s32.totalorder %s415_s9, 3 }
   0x4   : > { %p114_p2 = pnand %p356_p0, %p113_p1 }
   0x5   : > { %s357_s15 = sshll.u32 (!%p114_p2), %s352_s10, 3 }
   0x6   : > { %117 = sbr.rel (%p114_p2) target bundleno = 217 (0xd9), region = 28  ;;  %p136_p3 = scmp.lt.s32.totalorder (!%p114_p2), %s357_s15, 15 }
   0xb   : > { %v156_v0 = vld [vmem:[%s472_s1 + $0x8] sm:$0xff]  ;;  %v155_v1 = vld [vmem:[%s472_s1] sm:$0xff]  ;;  %s475_s15 = smov (!%p136_p3, %s357_s15), 15  ;;  %vm157_vm0 = vcmask 130048   ;;  %vm287_vm1 = vcmask 523264  }
   0xc   : > { %381 = vmatprep.subr.mxu0 %v156_v0  ;;  %397 = vmatprep.subr.mxu1 %v156_v0  ;;  %s358_s16 = sshll.u32 %s475_s15, 3 }
   0xd   : > { %382 = vmatpush3.msra.mxu0 %v156_v0  ;;  %399 = vmatpush3.msra.mxu1 %v156_v0  ;;  %s139_s19 = scalar_lea.vmem %s471_s0, %s358_s16  ;;  %s145_s22 = scalar_lea.vmem %s473_s2, %s358_s16 }
   0xe   : > { %383 = vmatprep.subr.mxu0 %v155_v1  ;;  %398 = vmatprep.subr.mxu1 %v155_v1  ;;  %v147_v2 = vld [vmem:[%s139_s19] sm:$0xff]  ;;  %v148_v4 = vld [vmem:[%s139_s19 + $0x8] sm:$0xff]  ;;  %v149_v6 = vld [vmem:[%s139_s19 + $0x10] sm:$0xff] }
   0xf   : > { %384 = vmatpush3.msra.mxu0 %v155_v1  ;;  %400 = vmatpush3.msra.mxu1 %v155_v1  ;;  %v151_v3 = vld [vmem:[%s139_s19 + $0x20] sm:$0xff]  ;;  %v152_v5 = vld [vmem:[%s139_s19 + $0x28] sm:$0xff]  ;;  %v153_v7 = vld [vmem:[%s139_s19 + $0x30] sm:$0xff] }
  0x10   : > { %385 = vmatprep.mubr.msk.f32.mxu0 %vm157_vm0, %v147_v2  ;;  %391 = vmatprep.mubr.msk.f32.mxu1 %vm157_vm0, %v151_v3  ;;  %v150_v8 = vld [vmem:[%s139_s19 + $0x18] sm:$0xff] }
  0x11   : > { %386 = vmatmul.mubr.msk.f32.vlgmr.msra.gmra.mxu0 %vm157_vm0, %v148_v4  ;;  %392 = vmatmul.mubr.msk.f32.vlgmr.msra.gmra.mxu1 %vm157_vm0, %v152_v5  ;;  %v154_v9 = vld [vmem:[%s139_s19 + $0x38] sm:$0xff] }
  0x12   : > { %388 = vmatprep.mubr.msk.f32.mxu0 %vm157_vm0, %v149_v6  ;;  %394 = vmatprep.mubr.msk.f32.mxu1 %vm157_vm0, %v153_v7 }
  0x15   : > { %389 = vmatmul.mubr.msk.f32.gmra.mxu0 %vm157_vm0, %v150_v8  ;;  %395 = vmatmul.mubr.msk.f32.gmra.mxu1 %vm157_vm0, %v154_v9 }
  0xd1   : > { %v387_v10 = vpop.f32.mrf.mxu0  ;;  %v393_v11 = vpop.f32.mrf.mxu1 }
  0xd2   : > { %289 = vst.msk [vmem:[%s145_s22 + $0x8] sm:$0xff] %vm287_vm1, %v387_v10  ;;  %293 = vst.msk [vmem:[%s145_s22 + $0x28] sm:$0xff] %vm287_vm1, %v393_v11 }
  0xd3   : > { %v248_v12 = vpop.f32.mrf.mxu0  ;;  %v268_v13 = vpop.f32.mrf.mxu1 }
  0xd4   : > { %288 = vst.msk [vmem:[%s145_s22] sm:$0xff] %vm287_vm1, %v248_v12  ;;  %292 = vst.msk [vmem:[%s145_s22 + $0x20] sm:$0xff] %vm287_vm1, %v268_v13 }
  0xd5   : > { %v390_v14 = vpop.f32.mrf.mxu0  ;;  %v396_v15 = vpop.f32.mrf.mxu1 }
  0xd6   : > { %291 = vst.msk [vmem:[%s145_s22 + $0x18] sm:$0xff] %vm287_vm1, %v390_v14  ;;  %295 = vst.msk [vmem:[%s145_s22 + $0x38] sm:$0xff] %vm287_vm1, %v396_v15 }
  0xd7   : > { %v258_v16 = vpop.f32.mrf.mxu0  ;;  %v278_v17 = vpop.f32.mrf.mxu1 }
  0xd8   : > { %290 = vst.msk [vmem:[%s145_s22 + $0x10] sm:$0xff] %vm287_vm1, %v258_v16  ;;  %294 = vst.msk [vmem:[%s145_s22 + $0x30] sm:$0xff] %vm287_vm1, %v278_v17 }
  0xd9 PF: > { %s12_s9 = sadd.s32 1, %s415_s9  }
  0xda   : > { %p9_p4 = scmp.ge.s32.totalorder %s12_s9, 4  }
  0xdc   :  { %11 = sbr.rel (!%p9_p4) target bundleno = 1 (0x1), region = 58 }

</bundles_post_ra>
